<compile_context>
chip_gen: v5e
topology: v5e:2x2
jax: 0.10.0
libtpu: 0.0.40
codegen_flags: <defaults>
</compile_context>

<pallas_src>
import functools

import jax
import jax.numpy as jnp
from jax.experimental import pallas as pl
from jax.experimental.pallas import tpu as pltpu


LEAKY_SLOPE = 0.01   # F.leaky_relu default negative_slope
BN_EPS = 1e-5        # nn.BatchNorm1d default eps
LANE = 128           # TPU lane width; output padded to a multiple of this


def _gcn_kernel(x_ref, adj_ref,
                w1_ref, b1_ref,
                w2_ref, sw2_ref, b2_ref,
                out_ref, *, reassociate):
    # In-kernel bf16 casts ride free VPU slots; avoids host-side casted copies.
    x = x_ref[...].astype(jnp.bfloat16)        # (N, nfeat)
    adj = adj_ref[...].astype(jnp.bfloat16)    # (N, N)

    # --- gc1: adj @ (x @ W1) + b1 -------------------------------------------
    # Re-association is a static (trace-time) decision, only taken on
    # 128-wide-MXU chips where it saves MXU passes.
    if reassociate:
        ax = jnp.dot(adj, x, preferred_element_type=jnp.float32)            # (N, nfeat)
        h = jnp.dot(ax.astype(jnp.bfloat16), w1_ref[...],
                    preferred_element_type=jnp.float32) + b1_ref[...]       # (N, nhid)
    else:
        s1 = jnp.dot(x, w1_ref[...], preferred_element_type=jnp.float32)    # (N, nhid)
        h = jnp.dot(adj, s1.astype(jnp.bfloat16),
                    preferred_element_type=jnp.float32) + b1_ref[...]

    # --- LeakyReLU: one VALU op (slope > 0 so max(h, slope*h) == leaky_relu) -
    h = jnp.maximum(h, LEAKY_SLOPE * h)

    # --- BatchNorm1d (eval): folded into w2_ref (scale) and sw2_ref (shift@W2)
    # --- Dropout: training=False -> identity ---------------------------------
    # TODO(synk): training-mode dropout (pltpu.prng_random_bits mask) and
    # batch-stat BN are not implemented; eval-mode semantics are used here.

    # --- gc2: adj @ (h @ W2_eff + shift@W2) + b2  (128-lane padded) ----------
    s2 = jnp.dot(h.astype(jnp.bfloat16), w2_ref[...],
                 preferred_element_type=jnp.float32) + sw2_ref[...]         # (N, 128)
    out_ref[...] = (jnp.dot(adj, s2.astype(jnp.bfloat16),
                            preferred_element_type=jnp.float32) + b2_ref[...])


def prepare_params(params):
    """One-time, hoisted out of the hot path: fold BN into gc2, pad gc2 to a
    lane-dense width, and cast weights to bf16 MXU operands."""
    nfeat, nhid = params["w1"].shape
    _, nclass = params["w2"].shape

    # BN(h) = h * scale + shift  (eval mode, running stats).
    scale = params["gamma"] * jax.lax.rsqrt(params["var"] + BN_EPS)   # (1, nhid)
    shift = params["beta"] - params["mean"] * scale                   # (1, nhid)

    # Lane-dense gc2: zero-pad weights/bias to a 128-lane multiple.
    nclass_p = max(LANE, pl.cdiv(nclass, LANE) * LANE)
    w2_p = jnp.zeros((nhid, nclass_p), jnp.float32).at[:, :nclass].set(params["w2"])
    b2_p = jnp.zeros((1, nclass_p), jnp.float32).at[:, :nclass].set(params["b2"])

    # Exact BN fold (independent of adj row sums):
    #   (h*scale + shift) @ W2 = h @ (scale[:,None]*W2) + shift @ W2
    w2_eff = scale.reshape(nhid, 1) * w2_p            # (nhid, nclass_p)
    shift_w2 = shift @ w2_p                           # (1, nclass_p)

    return {
        "w1": params["w1"].astype(jnp.bfloat16),
        "b1": params["b1"],                           # f32
        "w2": w2_eff.astype(jnp.bfloat16),
        "sw2": shift_w2,                              # f32
        "b2": b2_p,                                   # f32
        "nclass": nclass,
    }


@functools.partial(jax.jit, static_argnames=("nclass", "reassociate"))
def gcn_forward(x, adj, kp, *, nclass, reassociate=False):
    """Fused GCN forward. Everything is VMEM-resident at these sizes, so the
    whole forward runs as a single grid-less pallas_call; the trailing slice
    to nclass fuses into this jit."""
    N, nfeat = x.shape
    nhid, nclass_p = kp["w2"].shape

    args = (x, adj, kp["w1"], kp["b1"], kp["w2"], kp["sw2"], kp["b2"])

    flops = 2 * (N * N * nfeat           # adj @ x   (or x @ W1)
                 + N * nfeat * nhid      # (.) @ W1
                 + N * nhid * nclass_p   # h @ W2
                 + N * N * nclass_p)     # adj @ (.)
    flops += 2 * N * nhid                # leaky_relu
    bytes_accessed = (sum(int(a.size) * a.dtype.itemsize for a in args)
                      + N * nclass_p * 4)

    vmem = pl.BlockSpec(memory_space=pltpu.MemorySpace.VMEM)
    out_p = pl.pallas_call(
        functools.partial(_gcn_kernel, reassociate=reassociate),
        out_shape=jax.ShapeDtypeStruct((N, nclass_p), jnp.float32),
        in_specs=[vmem] * len(args),
        out_specs=vmem,
        cost_estimate=pl.CostEstimate(flops=flops, transcendentals=0,
                                      bytes_accessed=bytes_accessed),
    )(*args)
    return out_p[:, :nclass]


def prefer_reassociation(N, nhid):
    """(adj@x)@W1 only saves MXU passes on 128-wide MXUs (<= v5e); on the
    256-wide MXUs of v6e/v7x both orders cost the same, so keep straight order."""
    try:
        kind = jax.devices()[0].device_kind.lower()
    except Exception:
        return False
    narrow_mxu = any(t in kind for t in ("v2", "v3", "v4", "v5 lite", "v5lite", "v5e"))
    return bool(narrow_mxu and N < nhid)


def make_params(key, nfeat, nhid, nclass):
    """Deterministic synthetic parameters (shapes match the PyTorch module)."""
    ks = jax.random.split(key, 8)
    stdv1 = 1.0 / jnp.sqrt(nhid)
    stdv2 = 1.0 / jnp.sqrt(nclass)
    return {
        # GraphConvolution gc1: weight (nfeat, nhid), bias (nhid,)
        "w1": jax.random.uniform(ks[0], (nfeat, nhid), jnp.float32, -stdv1, stdv1),
        "b1": jax.random.uniform(ks[1], (1, nhid), jnp.float32, -stdv1, stdv1),
        # BatchNorm1d(nhid) affine params + running stats
        "gamma": 1.0 + 0.1 * jax.random.normal(ks[2], (1, nhid), jnp.float32),
        "beta": 0.1 * jax.random.normal(ks[3], (1, nhid), jnp.float32),
        "mean": 0.1 * jax.random.normal(ks[4], (1, nhid), jnp.float32),
        "var": jnp.abs(1.0 + 0.1 * jax.random.normal(ks[5], (1, nhid), jnp.float32)),
        # GraphConvolution gc2: weight (nhid, nclass), bias (nclass,)
        "w2": jax.random.uniform(ks[6], (nhid, nclass), jnp.float32, -stdv2, stdv2),
        "b2": jax.random.uniform(ks[7], (1, nclass), jnp.float32, -stdv2, stdv2),
    }


def reference_forward(x, adj, params):
    """Pure-JAX f32 reference for sanity checking."""
    h = adj @ (x @ params["w1"]) + params["b1"]
    h = jnp.where(h >= 0.0, h, LEAKY_SLOPE * h)
    h = (h - params["mean"]) * jax.lax.rsqrt(params["var"] + BN_EPS) \
        * params["gamma"] + params["beta"]
    return adj @ (h @ params["w2"]) + params["b2"]


if __name__ == "__main__":
    # nhid must be 256 because the module hard-codes nn.BatchNorm1d(256).
    N, nfeat, nhid, nclass = 64, 128, 256, 32
    dropout_p = 0.5  # unused in eval mode

    key = jax.random.PRNGKey(0)
    k_x, k_adj, k_p = jax.random.split(key, 3)

    x = jax.random.normal(k_x, (N, nfeat), jnp.float32)
    # Symmetric, row-normalized adjacency with self loops (dense).
    a = (jax.random.uniform(k_adj, (N, N)) < 0.1).astype(jnp.float32)
    a = jnp.maximum(a, a.T) + jnp.eye(N, dtype=jnp.float32)
    deg = jnp.sum(a, axis=1, keepdims=True)
    adj = a / deg

    params = make_params(k_p, nfeat, nhid, nclass)

    # One-time param prep (BN fold, padding, bf16 casts) hoisted off hot path.
    kp = jax.block_until_ready(prepare_params(params))
    reassoc = prefer_reassociation(N, nhid)

    out = gcn_forward(x, adj, kp, nclass=nclass, reassociate=reassoc)
    out = jax.block_until_ready(out)

    ref = reference_forward(x, adj, params)
    assert out.shape == (N, nclass)
    err = float(jnp.max(jnp.abs(out - ref)))
    # bf16 MXU operands => tolerance relaxed vs. pure-f32 reference.
    assert err < 2e-2, f"max abs err {err}"

    print("KERNEL_OK")
</pallas_src>

<mosaic_0001>
module attributes {stable_mosaic.version = 11 : i64} {
  func.func @_gcn_kernel(%arg0: memref<64x128xf32, #tpu.memory_space<vmem>>, %arg1: memref<64x64xf32, #tpu.memory_space<vmem>>, %arg2: memref<128x256xbf16, #tpu.memory_space<vmem>>, %arg3: memref<1x256xf32, #tpu.memory_space<vmem>>, %arg4: memref<256x128xbf16, #tpu.memory_space<vmem>>, %arg5: memref<1x128xf32, #tpu.memory_space<vmem>>, %arg6: memref<1x128xf32, #tpu.memory_space<vmem>>, %arg7: memref<64x128xf32, #tpu.memory_space<vmem>>) attributes {dimension_semantics = [], scalar_prefetch = 0 : i64, scratch_operands = 0 : i64, tpu.core_type = #tpu.core_type<tc>} {
    %c0 = arith.constant 0 : index
    %c0_0 = arith.constant 0 : index
    %0 = vector.load %arg0[%c0, %c0_0] : memref<64x128xf32, #tpu.memory_space<vmem>>, vector<64x128xf32>
    %1 = arith.truncf %0 : vector<64x128xf32> to vector<64x128xbf16>
    %c0_1 = arith.constant 0 : index
    %c0_2 = arith.constant 0 : index
    %2 = vector.load %arg1[%c0_1, %c0_2] : memref<64x64xf32, #tpu.memory_space<vmem>>, vector<64x64xf32>
    %3 = arith.truncf %2 : vector<64x64xf32> to vector<64x64xbf16>
    %c0_3 = arith.constant 0 : index
    %c0_4 = arith.constant 0 : index
    %4 = vector.load %arg2[%c0_3, %c0_4] : memref<128x256xbf16, #tpu.memory_space<vmem>>, vector<128x256xbf16>
    %cst = arith.constant dense<0.000000e+00> : vector<64x256xf32>
    %5 = tpu.matmul %1, %4, %cst {dimension_numbers = #tpu.dot_dimension_numbers<[1], [0], [0], [1], [0, 0, 1, 1], [], []>} : vector<64x128xbf16>, vector<128x256xbf16>, vector<64x256xf32> -> vector<64x256xf32>
    %6 = arith.truncf %5 : vector<64x256xf32> to vector<64x256xbf16>
    %cst_5 = arith.constant dense<0.000000e+00> : vector<64x256xf32>
    %7 = tpu.matmul %3, %6, %cst_5 {dimension_numbers = #tpu.dot_dimension_numbers<[1], [0], [0], [1], [0, 0, 1, 1], [], []>} : vector<64x64xbf16>, vector<64x256xbf16>, vector<64x256xf32> -> vector<64x256xf32>
    %c0_6 = arith.constant 0 : index
    %c0_7 = arith.constant 0 : index
    %8 = vector.load %arg3[%c0_6, %c0_7] : memref<1x256xf32, #tpu.memory_space<vmem>>, vector<1x256xf32>
    %9 = vector.broadcast %8 : vector<1x256xf32> to vector<64x256xf32>
    %10 = arith.addf %7, %9 : vector<64x256xf32>
    %cst_8 = arith.constant 0.00999999977 : f32
    %11 = vector.broadcast %cst_8 : f32 to vector<64x256xf32>
    %12 = arith.mulf %11, %10 : vector<64x256xf32>
    %13 = arith.maximumf %10, %12 : vector<64x256xf32>
    %14 = arith.truncf %13 : vector<64x256xf32> to vector<64x256xbf16>
    %c0_9 = arith.constant 0 : index
    %c0_10 = arith.constant 0 : index
    %15 = vector.load %arg4[%c0_9, %c0_10] : memref<256x128xbf16, #tpu.memory_space<vmem>>, vector<256x128xbf16>
    %cst_11 = arith.constant dense<0.000000e+00> : vector<64x128xf32>
    %16 = tpu.matmul %14, %15, %cst_11 {dimension_numbers = #tpu.dot_dimension_numbers<[1], [0], [0], [1], [0, 0, 1, 1], [], []>} : vector<64x256xbf16>, vector<256x128xbf16>, vector<64x128xf32> -> vector<64x128xf32>
    %c0_12 = arith.constant 0 : index
    %c0_13 = arith.constant 0 : index
    %17 = vector.load %arg5[%c0_12, %c0_13] : memref<1x128xf32, #tpu.memory_space<vmem>>, vector<1x128xf32>
    %18 = vector.broadcast %17 : vector<1x128xf32> to vector<64x128xf32>
    %19 = arith.addf %16, %18 : vector<64x128xf32>
    %20 = arith.truncf %19 : vector<64x128xf32> to vector<64x128xbf16>
    %cst_14 = arith.constant dense<0.000000e+00> : vector<64x128xf32>
    %21 = tpu.matmul %3, %20, %cst_14 {dimension_numbers = #tpu.dot_dimension_numbers<[1], [0], [0], [1], [0, 0, 1, 1], [], []>} : vector<64x64xbf16>, vector<64x128xbf16>, vector<64x128xf32> -> vector<64x128xf32>
    %c0_15 = arith.constant 0 : index
    %c0_16 = arith.constant 0 : index
    %22 = vector.load %arg6[%c0_15, %c0_16] : memref<1x128xf32, #tpu.memory_space<vmem>>, vector<1x128xf32>
    %23 = vector.broadcast %22 : vector<1x128xf32> to vector<64x128xf32>
    %24 = arith.addf %21, %23 : vector<64x128xf32>
    %c0_17 = arith.constant 0 : index
    %c0_18 = arith.constant 0 : index
    %25 = vector.load %arg7[%c0_17, %c0_18] : memref<64x128xf32, #tpu.memory_space<vmem>>, vector<64x128xf32>
    tpu.vector_store %arg7[%c0_17, %c0_18], %24 {strides = array<i32>} : memref<64x128xf32, #tpu.memory_space<vmem>>, vector<64x128xf32>,
    return
  }
}

</mosaic_0001>

<bundles_post_ra>
// kernel: gcn_forward.1
= control target key start
LH: loop header
LB: loop body
LE: loop exit
PB: predicated region body
PF: predicated region fallthrough
CT: control target
= control target key end

     0   :  { %12 = vsyncpa [#allocation3], 0  ;;  %s1091_s0 = inlined_call_operand.hbm [shape: f32[64,128], index: 0, kind: input, shape index: {}]   ;;  %s1092_s1 = inlined_call_operand.hbm [shape: f32[64,64], index: 1, kind: input, shape index: {}]   ;;  %s1093_s2 = inlined_call_operand.hbm [shape: bf16[128,256], index: 2, kind: input, shape index: {}]   ;;  %s1094_s3 = inlined_call_operand.hbm [shape: f32[1,256], index: 3, kind: input, shape index: {}]   ;;  %s1095_s4 = inlined_call_operand.hbm [shape: bf16[256,128], index: 4, kind: input, shape index: {}]   ;;  %s1096_s5 = inlined_call_operand.vmem [shape: f32[1,128], index: 5, kind: input, shape index: {}]   ;;  %s1097_s6 = inlined_call_operand.vmem [shape: f32[1,128], index: 6, kind: input, shape index: {}]   ;;  %s1098_s7 = inlined_call_operand.vmem [shape: f32[64,128], index: 7, kind: output, shape index: {}]  }
   0x1   :  { %13 = vsyncpa [#allocation5], 0 }
   0x2   :  { %14 = vsyncpa [#allocation8], 0  ;;  %s32_s26 = sshll.u32 %s1092_s1, 4  ;;  %s965_s27 = smov [#allocation4]   ;;  %s33_s26 = int_to_ptr.hbm [resolvable:$true] %s32_s26 }
   0x3   :  { %s34_s28 = sshll.u32 %s965_s27, 4  ;;  %s59_s8 = sshll.u32 %s1094_s3, 4  ;;  %s35_s28 = int_to_ptr.vmem [resolvable:$true] %s34_s28  ;;  %s60_s8 = int_to_ptr.hbm [resolvable:$true] %s59_s8 }
   0x4   :  { %s966_s9 = smov 128   ;;  %s967_s10 = smov 8  }
   0x5   :  { %40 = dma.hbm_to_vmem [thread:$0]  %s33_s26, 1024, %s35_s28, [#allocation5], %s966_s9, %s966_s9, %s967_s10  }
   0x6   :  { %s968_s11 = smov [#allocation7]   ;;  %s19_s15 = sshll.u32 %s1091_s0, 4  ;;  %s20_s15 = int_to_ptr.hbm [resolvable:$true] %s19_s15 }
   0x7   :  { %s61_s12 = sshll.u32 %s968_s11, 4  ;;  %s45_s17 = sshll.u32 %s1093_s2, 4  ;;  %s62_s12 = int_to_ptr.vmem [resolvable:$true] %s61_s12  ;;  %s46_s17 = int_to_ptr.hbm [resolvable:$true] %s45_s17 }
   0x8   :  { %64 = dma.hbm_to_vmem [thread:$0]  %s60_s8, 32, %s62_s12, [#allocation8]  }
   0x9   :  { %s969_s18 = smov [#allocation2]   ;;  %s970_s3 = smov [#allocation6]  }
   0xa   :  { %s21_s19 = sshll.u32 %s969_s18, 4  ;;  %s47_s20 = sshll.u32 %s970_s3, 4  ;;  %s22_s19 = int_to_ptr.vmem [resolvable:$true] %s21_s19  ;;  %s48_s20 = int_to_ptr.vmem [resolvable:$true] %s47_s20 }
   0xb   :  { %27 = dma.hbm_to_vmem [thread:$0]  %s20_s15, 1024, %s22_s19, [#allocation3], %s966_s9, %s966_s9, %s967_s10  }
   0xc   :  { %s69_s23 = sshll.u32 %s1095_s4, 4  ;;  %s971_s0 = smov [#allocation9]   ;;  %s70_s23 = int_to_ptr.hbm [resolvable:$true] %s69_s23 }
   0xd   :  { %53 = dma.hbm_to_vmem [thread:$0]  %s46_s17, 2048, %s48_s20, [#allocation5], %s966_s9, %s966_s9, %s967_s10  }
   0xe   :  { %s71_s24 = sshll.u32 %s971_s0, 4  ;;  %s972_s25 = smov 64   ;;  %s72_s24 = int_to_ptr.vmem [resolvable:$true] %s71_s24 }
   0xf   :  { %s973_s26 = smov 4  }
  0x10   :  { %77 = dma.hbm_to_vmem [thread:$0]  %s70_s23, 2048, %s72_s24, [#allocation8], %s972_s25, %s972_s25, %s973_s26  }
  0x11   :  { %959 = dma.done.wait [#allocation3], 1024  }
  0x12   :  { %960 = vsyncadd [#allocation3], 4294966272 }
  0x13   :  { %961 = dma.done.wait [#allocation5], 3072  }
  0x14   :  { %962 = vsyncadd [#allocation5], 4294964224 }
  0x15   :  { %963 = dma.done.wait [#allocation8], 2080  }
  0x16   :  { %964 = vsyncadd [#allocation8], 4294965216  ;;  %v706_v0 = vld [vmem:[#allocation6 + $0x70] sm:$0xf]  ;;  %v803_v1 = vld [vmem:[#allocation6 + $0x74] sm:$0xf0] }
  0x17   :  { %v698_v2 = vld [vmem:[#allocation6 + $0x60] sm:$0xf]  ;;  %v707_v3 = vor.u32 %v803_v1, %v706_v0  ;;  %v801_v4 = vld [vmem:[#allocation6 + $0x64] sm:$0xf0]  ;;  %v690_v6 = vld [vmem:[#allocation6 + $0x50] sm:$0xf] }
  0x18   :  { %v699_v5 = vor.u32 %v801_v4, %v698_v2  ;;  %v799_v7 = vld [vmem:[#allocation6 + $0x54] sm:$0xf0]  ;;  %v682_v9 = vld [vmem:[#allocation6 + $0x40] sm:$0xf]  ;;  %v797_v10 = vld [vmem:[#allocation6 + $0x44] sm:$0xf0] }
  0x19   :  { %820 = vmatpush.bf16.msra.mxu1 %v707_v3  ;;  %223 = vmatpush.bf16.msra.mxu0 %v707_v3  ;;  %v691_v8 = vor.u32 %v799_v7, %v690_v6  ;;  %v683_v11 = vor.u32 %v797_v10, %v682_v9  ;;  %v674_v12 = vld [vmem:[#allocation6 + $0x30] sm:$0xf]  ;;  %v795_v13 = vld [vmem:[#allocation6 + $0x34] sm:$0xf0]  ;;  %v666_v15 = vld [vmem:[#allocation6 + $0x20] sm:$0xf] }
  0x1a   :  { %v675_v14 = vor.u32 %v795_v13, %v674_v12  ;;  %v793_v16 = vld [vmem:[#allocation6 + $0x24] sm:$0xf0]  ;;  %v658_v18 = vld [vmem:[#allocation6 + $0x10] sm:$0xf]  ;;  %v791_v19 = vld [vmem:[#allocation6 + $0x14] sm:$0xf0] }
  0x1b   :  { %v667_v17 = vor.u32 %v793_v16, %v666_v15  ;;  %v659_v20 = vor.u32 %v791_v19, %v658_v18  ;;  %v650_v21 = vld [vmem:[#allocation6] sm:$0xf]  ;;  %v789_v22 = vld [vmem:[#allocation6 + $0x4] sm:$0xf0]  ;;  %v802_v23 = vld [vmem:[#allocation6 + $0x74] sm:$0xf] }
  0x1c   :  { %v708_v24 = vld [vmem:[#allocation6 + $0x78] sm:$0xf0]  ;;  %v651_v25 = vor.u32 %v789_v22, %v650_v21  ;;  %v107_v26 = vld [vmem:[#allocation2 + $0x20] sm:$0xff]  ;;  %v108_v27 = vld [vmem:[#allocation2 + $0x28] sm:$0xff]  ;;  %vm295_vm0 = vcmask 523264  }
  0x1d   :  { %821 = vmatpush.bf16.msra.mxu1 %v699_v5  ;;  %224 = vmatpush.bf16.msra.mxu0 %v699_v5  ;;  %v711_v28 = vor.u32 %v802_v23, %v708_v24  ;;  %v800_v29 = vld [vmem:[#allocation6 + $0x64] sm:$0xf]  ;;  %v700_v30 = vld [vmem:[#allocation6 + $0x68] sm:$0xf0]  ;;  %v113_v33 = vpack.c.bf16 %v108_v27, %v107_v26  ;;  %v798_v36 = vld [vmem:[#allocation6 + $0x54] sm:$0xf] }
  0x1e   :  { %v103_v31 = vld [vmem:[#allocation2] sm:$0xff]  ;;  %v104_v32 = vld [vmem:[#allocation2 + $0x8] sm:$0xff]  ;;  %v703_v34 = vor.u32 %v800_v29, %v700_v30  ;;  %v692_v37 = vld [vmem:[#allocation6 + $0x58] sm:$0xf0] }
  0x1f   :  { %v111_v35 = vpack.c.bf16 %v104_v32, %v103_v31  ;;  %v695_v38 = vor.u32 %v798_v36, %v692_v37  ;;  %v796_v39 = vld [vmem:[#allocation6 + $0x44] sm:$0xf]  ;;  %v684_v40 = vld [vmem:[#allocation6 + $0x48] sm:$0xf0]  ;;  %v794_v42 = vld [vmem:[#allocation6 + $0x34] sm:$0xf] }
  0x20   :  { %v687_v41 = vor.u32 %v796_v39, %v684_v40  ;;  %v676_v43 = vld [vmem:[#allocation6 + $0x38] sm:$0xf0]  ;;  %v109_v44 = vld [vmem:[#allocation2 + $0x30] sm:$0xff]  ;;  %v792_v47 = vld [vmem:[#allocation6 + $0x24] sm:$0xf] }
  0x21   :  { %822 = vmatpush.bf16.msra.mxu1 %v691_v8  ;;  %225 = vmatpush.bf16.msra.mxu0 %v691_v8  ;;  %v110_v45 = vld [vmem:[#allocation2 + $0x38] sm:$0xff]  ;;  %v679_v46 = vor.u32 %v794_v42, %v676_v43  ;;  %v668_v48 = vld [vmem:[#allocation6 + $0x28] sm:$0xf0]  ;;  %v105_v49 = vld [vmem:[#allocation2 + $0x10] sm:$0xff] }
  0x22   :  { %v106_v50 = vld [vmem:[#allocation2 + $0x18] sm:$0xff]  ;;  %v114_v51 = vpack.c.bf16 %v110_v45, %v109_v44  ;;  %v671_v52 = vor.u32 %v792_v47, %v668_v48  ;;  %v790_v54 = vld [vmem:[#allocation6 + $0x14] sm:$0xf]  ;;  %v788_v57 = vld [vmem:[#allocation6 + $0x4] sm:$0xf] }
  0x23   :  { %v112_v53 = vpack.c.bf16 %v106_v50, %v105_v49  ;;  %v660_v55 = vld [vmem:[#allocation6 + $0x18] sm:$0xf0]  ;;  %v652_v58 = vld [vmem:[#allocation6 + $0x8] sm:$0xf0]  ;;  %v117_v16 = vld [vmem:[#allocation4 + $0x10] sm:$0xff] }
  0x24   :  { %v663_v56 = vor.u32 %v790_v54, %v660_v55  ;;  %v655_v59 = vor.u32 %v788_v57, %v652_v58  ;;  %v116_v12 = vld [vmem:[#allocation4 + $0x8] sm:$0xff]  ;;  %v121_v27 = vld [vmem:[#allocation4 + $0x30] sm:$0xff]  ;;  %v811_v32 = vld [vmem:[#allocation9 + $0x38] sm:$0xff] }
  0x25   :  { %823 = vmatpush.bf16.msra.mxu1 %v683_v11  ;;  %226 = vmatpush.bf16.msra.mxu0 %v683_v11  ;;  %v115_v11 = vld [vmem:[#allocation4] sm:$0xff]  ;;  %v120_v21 = vld [vmem:[#allocation4 + $0x28] sm:$0xff]  ;;  %v806_v40 = vld [vmem:[#allocation9 + $0x10] sm:$0xff] }
  0x26   :  { %v1029_v13 = vpack.c.bf16 %v116_v12, %v115_v11  ;;  %v809_v36 = vld [vmem:[#allocation9 + $0x28] sm:$0xff]  ;;  %v808_v37 = vld [vmem:[#allocation9 + $0x20] sm:$0xff]  ;;  %v289_v44 = vld [vmem:[#allocation7] sm:$0x3] }
  0x27   :  { %v817_v39 = vld [vmem:[#allocation9 + $0x68] sm:$0xff]  ;;  %v816_v42 = vld [vmem:[#allocation9 + $0x60] sm:$0xff]  ;;  %v291_v45 = vperm.slane %v289_v44, 0  ;;  %v815_v57 = vld [vmem:[#allocation9 + $0x58] sm:$0xff] }
  0x28   :  { %v804_v43 = vld [vmem:[#allocation9] sm:$0xff] }
  0x29   :  { %824 = vmatpush.bf16.msra.mxu1 %v675_v14  ;;  %227 = vmatpush.bf16.msra.mxu0 %v675_v14 }
  0x2d   :  { %825 = vmatpush.bf16.msra.mxu1 %v667_v17  ;;  %228 = vmatpush.bf16.msra.mxu0 %v667_v17  ;;  %v118_v17 = vld [vmem:[#allocation4 + $0x18] sm:$0xff] }
  0x2e   :  { %v1033_v18 = vpack.c.bf16 %v118_v17, %v117_v16  ;;  %v292_v17 = vperm.slane %v289_v44, 1 }
  0x31   :  { %826 = vmatpush.bf16.msra.mxu1 %v659_v20  ;;  %229 = vmatpush.bf16.msra.mxu0 %v659_v20  ;;  %v119_v20 = vld [vmem:[#allocation4 + $0x20] sm:$0xff] }
  0x32   :  { %v1037_v23 = vpack.c.bf16 %v120_v21, %v119_v20 }
  0x35   :  { %827 = vmatpush.bf16.msra.mxu1 %v651_v25  ;;  %230 = vmatpush.bf16.msra.mxu0 %v651_v25 }
  0x38   :  { %241 = vmatmul.bf16.vlgmr.msra.gmra.mxu1 %v113_v33  ;;  %231 = vmatmul.bf16.vlgmr.msra.gmra.mxu0 %v111_v35 }
  0x39   :  { %252 = vmatpush.bf16.msrb.mxu1 %v711_v28  ;;  %v122_v28 = vld [vmem:[#allocation4 + $0x38] sm:$0xff] }
  0x3a   :  { %v1041_v30 = vpack.c.bf16 %v122_v28, %v121_v27 }
  0x3d   :  { %253 = vmatpush.bf16.msrb.mxu1 %v703_v34  ;;  %v810_v34 = vld [vmem:[#allocation9 + $0x30] sm:$0xff] }
  0x41   :  { %254 = vmatpush.bf16.msrb.mxu1 %v695_v38  ;;  %v807_v38 = vld [vmem:[#allocation9 + $0x18] sm:$0xff] }
  0x45   :  { %255 = vmatpush.bf16.msrb.mxu1 %v687_v41  ;;  %v805_v41 = vld [vmem:[#allocation9 + $0x8] sm:$0xff] }
  0x48   :  { %246 = vmatmul.bf16.gmra.mxu1 %v114_v51  ;;  %236 = vmatmul.bf16.gmra.mxu0 %v112_v53 }
  0x49   :  { %256 = vmatpush.bf16.msrb.mxu1 %v679_v46 }
  0x4d   :  { %257 = vmatpush.bf16.msrb.mxu1 %v671_v52 }
  0x51   :  { %258 = vmatpush.bf16.msrb.mxu1 %v663_v56 }
  0x55   :  { %259 = vmatpush.bf16.msrb.mxu1 %v655_v59 }
  0x58   :  { %260 = vmatmul.bf16.vlgmr.msrb.gmra.mxu1 %v111_v35  ;;  %v818_v35 = vld [vmem:[#allocation9 + $0x70] sm:$0xff] }
  0x68   :  { %265 = vmatmul.bf16.gmra.mxu1 %v112_v53 }
  0x78   :  { %270 = vmatmul.bf16.gmra.mxu1 %v113_v33  ;;  %v819_v33 = vld [vmem:[#allocation9 + $0x78] sm:$0xff] }
  0x88   :  { %275 = vmatmul.bf16.gmra.mxu1 %v114_v51 }
  0xb5   :  { %v242_v60 = vpop.f32.mrf.mxu1  ;;  %v232_v62 = vpop.f32.mrf.mxu0 }
  0xbd   :  { %v244_v61 = vpop.f32.mrf.mxu1  ;;  %v234_v0 = vpop.f32.mrf.mxu0 }
  0xbe   :  { %v285_v4 = vpack.c.bf16 %v244_v61, %v242_v60  ;;  %v281_v8 = vpack.c.bf16 %v234_v0, %v232_v62  ;;  %v814_v60 = vld [vmem:[#allocation9 + $0x50] sm:$0xff]  ;;  %v813_v0 = vld [vmem:[#allocation9 + $0x48] sm:$0xff] }
  0xc5   :  { %v247_v63 = vpop.f32.mrf.mxu1  ;;  %v237_v3 = vpop.f32.mrf.mxu0 }
  0xcd   :  { %v249_v1 = vpop.f32.mrf.mxu1  ;;  %v239_v6 = vpop.f32.mrf.mxu0 }
  0xce   :  { %v287_v2 = vpack.c.bf16 %v249_v1, %v247_v63  ;;  %v283_v7 = vpack.c.bf16 %v239_v6, %v237_v3 }
  0xd0   :  { %312 = vmatpush.bf16.msra.mxu2 %v287_v2 }
  0xd4   :  { %313 = vmatpush.bf16.msra.mxu2 %v285_v4  ;;  %v812_v4 = vld [vmem:[#allocation9 + $0x40] sm:$0xff] }
  0xd5   :  { %v261_v5 = vpop.f32.mrf.mxu1 }
  0xd8   :  { %314 = vmatpush.bf16.msra.mxu2 %v283_v7 }
  0xdc   :  { %315 = vmatpush.bf16.msra.mxu2 %v281_v8 }
  0xdd   :  { %v263_v9 = vpop.f32.mrf.mxu1 }
  0xde   :  { %v282_v31 = vpack.c.bf16 %v263_v9, %v261_v5 }
  0xdf   :  { %712 = vmatmul.msk.bf16.vlgmr.msra.gmra.mxu2 %vm295_vm0, %v1029_v13 }
  0xe0   :  { %538 = vmatpush.bf16.msrb.mxu2 %v811_v32 }
  0xe4   :  { %539 = vmatpush.bf16.msrb.mxu2 %v810_v34 }
  0xe5   :  { %v266_v10 = vpop.f32.mrf.mxu1 }
  0xe8   :  { %540 = vmatpush.bf16.msrb.mxu2 %v809_v36 }
  0xec   :  { %541 = vmatpush.bf16.msrb.mxu2 %v808_v37 }
  0xed   :  { %v268_v14 = vpop.f32.mrf.mxu1 }
  0xee   :  { %v284_v29 = vpack.c.bf16 %v268_v14, %v266_v10 }
  0xef   :  { %713 = vmatmul.msk.bf16.gmra.mxu2 %vm295_vm0, %v1033_v18 }
  0xf0   :  { %542 = vmatpush.bf16.msrb.mxu2 %v807_v38 }
  0xf4   :  { %543 = vmatpush.bf16.msrb.mxu2 %v806_v40 }
  0xf5   :  { %v271_v15 = vpop.f32.mrf.mxu1 }
  0xf8   :  { %544 = vmatpush.bf16.msrb.mxu2 %v805_v41 }
  0xfc   :  { %545 = vmatpush.bf16.msrb.mxu2 %v804_v43 }
  0xfd   :  { %v273_v19 = vpop.f32.mrf.mxu1 }
  0xfe   :  { %v286_v26 = vpack.c.bf16 %v273_v19, %v271_v15 }
  0xff   :  { %714 = vmatmul.msk.bf16.gmra.mxu2 %vm295_vm0, %v1037_v23 }
 0x105   :  { %v276_v22 = vpop.f32.mrf.mxu1 }
 0x10d   :  { %v278_v24 = vpop.f32.mrf.mxu1 }
 0x10e   :  { %v288_v25 = vpack.c.bf16 %v278_v24, %v276_v22 }
 0x10f   :  { %715 = vmatmul.msk.bf16.gmra.mxu2 %vm295_vm0, %v1041_v30 }
 0x110   :  { %341 = vmatpush.bf16.msra.mxu3 %v288_v25 }
 0x114   :  { %342 = vmatpush.bf16.msra.mxu3 %v286_v26 }
 0x118   :  { %343 = vmatpush.bf16.msra.mxu3 %v284_v29 }
 0x11c   :  { %344 = vmatpush.bf16.msra.mxu3 %v282_v31 }
 0x11f   :  { %716 = vmatmul.msk.bf16.vlgmr.msra.gmra.mxu3 %vm295_vm0, %v1029_v13 }
 0x120   :  { %567 = vmatpush.bf16.msrb.mxu3 %v819_v33 }
 0x124   :  { %568 = vmatpush.bf16.msrb.mxu3 %v818_v35 }
 0x128   :  { %569 = vmatpush.bf16.msrb.mxu3 %v817_v39 }
 0x12c   :  { %570 = vmatpush.bf16.msrb.mxu3 %v816_v42 }
 0x12f   :  { %717 = vmatmul.msk.bf16.gmra.mxu3 %vm295_vm0, %v1033_v18 }
 0x130   :  { %571 = vmatpush.bf16.msrb.mxu3 %v815_v57 }
 0x134   :  { %572 = vmatpush.bf16.msrb.mxu3 %v814_v60 }
 0x138   :  { %573 = vmatpush.bf16.msrb.mxu3 %v813_v0 }
 0x13c   :  { %574 = vmatpush.bf16.msrb.mxu3 %v812_v4 }
 0x13f   :  { %718 = vmatmul.msk.bf16.gmra.mxu3 %vm295_vm0, %v1037_v23 }
 0x14f   :  { %719 = vmatmul.msk.bf16.gmra.mxu3 %vm295_vm0, %v1041_v30 }
 0x162   :  { %v317_v46 = vpop.f32.mrf.mxu2 }
 0x163   :  { %v318_v47 = vadd.f32 %v317_v46, %v291_v45 }
 0x165   :  { %v366_v48 = vmul.f32 0.01, %v318_v47 }
 0x167   :  { %v382_v51 = vmax.f32 %v318_v47, %v366_v48 }
 0x16a   :  { %v319_v49 = vpop.f32.mrf.mxu2 }
 0x16b   :  { %v320_v50 = vadd.f32 %v319_v49, %v291_v45 }
 0x16d   :  { %v368_v52 = vmul.f32 0.01, %v320_v50 }
 0x16f   :  { %v384_v53 = vmax.f32 %v320_v50, %v368_v52 }
 0x171   :  { %v398_v54 = vpack.c.bf16 %v384_v53, %v382_v51 }
 0x172   :  { %v322_v55 = vpop.f32.mrf.mxu2 }
 0x173   :  { %546 = vmatmul.bf16.vlgmr.msrb.gmra.mxu2 %v398_v54  ;;  %v323_v56 = vadd.f32 %v322_v55, %v291_v45 }
 0x175   :  { %v370_v58 = vmul.f32 0.01, %v323_v56 }
 0x177   :  { %v386_v62 = vmax.f32 %v323_v56, %v370_v58 }
 0x17a   :  { %v324_v59 = vpop.f32.mrf.mxu2 }
 0x17b   :  { %v325_v61 = vadd.f32 %v324_v59, %v291_v45 }
 0x17d   :  { %v372_v63 = vmul.f32 0.01, %v325_v61 }
 0x17f   :  { %v388_v1 = vmax.f32 %v325_v61, %v372_v63 }
 0x181   :  { %v400_v2 = vpack.c.bf16 %v388_v1, %v386_v62  ;;  %v837_v1 = vld [vmem:[%s1096_s5] ss:$0 sm:$0xff] }
 0x182   :  { %v327_v3 = vpop.f32.mrf.mxu2 }
 0x183   :  { %551 = vmatmul.bf16.gmra.mxu2 %v400_v2  ;;  %v328_v5 = vadd.f32 %v327_v3, %v291_v45 }
 0x185   :  { %v374_v6 = vmul.f32 0.01, %v328_v5 }
 0x187   :  { %v390_v9 = vmax.f32 %v328_v5, %v374_v6 }
 0x18a   :  { %v329_v7 = vpop.f32.mrf.mxu2 }
 0x18b   :  { %v330_v8 = vadd.f32 %v329_v7, %v291_v45 }
 0x18d   :  { %v376_v10 = vmul.f32 0.01, %v330_v8 }
 0x18f   :  { %v392_v11 = vmax.f32 %v330_v8, %v376_v10 }
 0x191   :  { %v402_v12 = vpack.c.bf16 %v392_v11, %v390_v9 }
 0x192   :  { %v332_v14 = vpop.f32.mrf.mxu2 }
 0x193   :  { %556 = vmatmul.bf16.gmra.mxu2 %v402_v12  ;;  %v333_v15 = vadd.f32 %v332_v14, %v291_v45 }
 0x195   :  { %v378_v19 = vmul.f32 0.01, %v333_v15 }
 0x197   :  { %v394_v24 = vmax.f32 %v333_v15, %v378_v19 }
 0x19a   :  { %v334_v20 = vpop.f32.mrf.mxu2 }
 0x19b   :  { %v335_v22 = vadd.f32 %v334_v20, %v291_v45 }
 0x19d   :  { %v380_v25 = vmul.f32 0.01, %v335_v22 }
 0x19f   :  { %v396_v29 = vmax.f32 %v335_v22, %v380_v25 }
 0x1a1   :  { %v404_v32 = vpack.c.bf16 %v396_v29, %v394_v24 }
 0x1a2   :  { %v346_v16 = vpop.f32.mrf.mxu3 }
 0x1a3   :  { %v347_v21 = vadd.f32 %v346_v16, %v292_v17  ;;  %561 = vmatmul.bf16.gmra.mxu2 %v404_v32 }
 0x1a5   :  { %v367_v27 = vmul.f32 0.01, %v347_v21 }
 0x1a7   :  { %v383_v33 = vmax.f32 %v347_v21, %v367_v27 }
 0x1aa   :  { %v348_v26 = vpop.f32.mrf.mxu3 }
 0x1ab   :  { %v349_v28 = vadd.f32 %v348_v26, %v292_v17 }
 0x1ad   :  { %v369_v31 = vmul.f32 0.01, %v349_v28 }
 0x1af   :  { %v385_v34 = vmax.f32 %v349_v28, %v369_v31 }
 0x1b1   :  { %v399_v35 = vpack.c.bf16 %v385_v34, %v383_v33 }
 0x1b2   :  { %v351_v36 = vpop.f32.mrf.mxu3 }
 0x1b3   :  { %575 = vmatmul.bf16.vlgmr.msrb.gmra.mxu3 %v399_v35  ;;  %v352_v37 = vadd.f32 %v351_v36, %v292_v17 }
 0x1b5   :  { %v371_v39 = vmul.f32 0.01, %v352_v37 }
 0x1b7   :  { %v387_v42 = vmax.f32 %v352_v37, %v371_v39 }
 0x1ba   :  { %v353_v38 = vpop.f32.mrf.mxu3 }
 0x1bb   :  { %v354_v40 = vadd.f32 %v353_v38, %v292_v17 }
 0x1bd   :  { %v373_v41 = vmul.f32 0.01, %v354_v40 }
 0x1bf   :  { %v389_v43 = vmax.f32 %v354_v40, %v373_v41  ;;  %v838_v40 = vld [vmem:[%s1097_s6] ss:$0 sm:$0xff] }
 0x1c1   :  { %v401_v44 = vpack.c.bf16 %v389_v43, %v387_v42 }
 0x1c2   :  { %v356_v45 = vpop.f32.mrf.mxu3 }
 0x1c3   :  { %580 = vmatmul.bf16.gmra.mxu3 %v401_v44  ;;  %v357_v46 = vadd.f32 %v356_v45, %v292_v17 }
 0x1c5   :  { %v375_v48 = vmul.f32 0.01, %v357_v46 }
 0x1c7   :  { %v391_v51 = vmax.f32 %v357_v46, %v375_v48 }
 0x1ca   :  { %v358_v47 = vpop.f32.mrf.mxu3 }
 0x1cb   :  { %v359_v49 = vadd.f32 %v358_v47, %v292_v17 }
 0x1cd   :  { %v377_v50 = vmul.f32 0.01, %v359_v49 }
 0x1cf   :  { %v393_v52 = vmax.f32 %v359_v49, %v377_v50 }
 0x1d1   :  { %v403_v53 = vpack.c.bf16 %v393_v52, %v391_v51 }
 0x1d2   :  { %v361_v54 = vpop.f32.mrf.mxu3 }
 0x1d3   :  { %585 = vmatmul.bf16.gmra.mxu3 %v403_v53  ;;  %v362_v55 = vadd.f32 %v361_v54, %v292_v17 }
 0x1d5   :  { %v379_v57 = vmul.f32 0.01, %v362_v55 }
 0x1d7   :  { %v395_v60 = vmax.f32 %v362_v55, %v379_v57 }
 0x1da   :  { %v363_v56 = vpop.f32.mrf.mxu3 }
 0x1db   :  { %v364_v58 = vadd.f32 %v363_v56, %v292_v17 }
 0x1dd   :  { %v381_v59 = vmul.f32 0.01, %v364_v58 }
 0x1df   :  { %v397_v61 = vmax.f32 %v364_v58, %v381_v59 }
 0x1e1   :  { %v405_v62 = vpack.c.bf16 %v397_v61, %v395_v60 }
 0x1e3   :  { %590 = vmatmul.bf16.gmra.mxu3 %v405_v62 }
 0x1f6   :  { %v547_v63 = vpop.f32.mrf.mxu2 }
 0x1f7   :  { %v548_v2 = vadd.f32 %v837_v1, %v547_v63 }
 0x1fe   :  { %v549_v0 = vpop.f32.mrf.mxu2 }
 0x1ff   :  { %v550_v35 = vadd.f32 %v837_v1, %v549_v0 }
 0x206   :  { %v552_v5 = vpop.f32.mrf.mxu2 }
 0x207   :  { %v553_v32 = vadd.f32 %v837_v1, %v552_v5 }
 0x20e   :  { %v554_v7 = vpop.f32.mrf.mxu2 }
 0x20f   :  { %v555_v29 = vadd.f32 %v837_v1, %v554_v7 }
 0x216   :  { %v557_v9 = vpop.f32.mrf.mxu2 }
 0x217   :  { %v558_v26 = vadd.f32 %v837_v1, %v557_v9 }
 0x21e   :  { %v559_v11 = vpop.f32.mrf.mxu2 }
 0x21f   :  { %v560_v22 = vadd.f32 %v837_v1, %v559_v11 }
 0x226   :  { %v562_v15 = vpop.f32.mrf.mxu2 }
 0x227   :  { %v563_v19 = vadd.f32 %v837_v1, %v562_v15 }
 0x22e   :  { %v564_v17 = vpop.f32.mrf.mxu2 }
 0x22f   :  { %v565_v20 = vadd.f32 %v837_v1, %v564_v17 }
 0x236   :  { %v576_v3 = vpop.f32.mrf.mxu3 }
 0x237   :  { %v577_v4 = vadd.f32 %v576_v3, %v548_v2 }
 0x23e   :  { %v578_v6 = vpop.f32.mrf.mxu3 }
 0x23f   :  { %v579_v37 = vadd.f32 %v578_v6, %v550_v35 }
 0x241   :  { %v596_v39 = vpack.c.bf16 %v579_v37, %v577_v4 }
 0x246   :  { %v581_v8 = vpop.f32.mrf.mxu3 }
 0x247   :  { %v582_v36 = vadd.f32 %v581_v8, %v553_v32 }
 0x24e   :  { %v583_v10 = vpop.f32.mrf.mxu3 }
 0x24f   :  { %v584_v33 = vadd.f32 %v583_v10, %v555_v29 }
 0x251   :  { %v597_v38 = vpack.c.bf16 %v584_v33, %v582_v36 }
 0x256   :  { %v586_v12 = vpop.f32.mrf.mxu3 }
 0x257   :  { %v587_v31 = vadd.f32 %v586_v12, %v558_v26 }
 0x25e   :  { %v588_v14 = vpop.f32.mrf.mxu3 }
 0x25f   :  { %v589_v27 = vadd.f32 %v588_v14, %v560_v22 }
 0x261   :  { %v598_v34 = vpack.c.bf16 %v589_v27, %v587_v31 }
 0x266   :  { %v591_v16 = vpop.f32.mrf.mxu3 }
 0x267   :  { %v592_v24 = vadd.f32 %v591_v16, %v563_v19 }
 0x26e   :  { %v593_v21 = vpop.f32.mrf.mxu3 }
 0x26f   :  { %v594_v25 = vadd.f32 %v593_v21, %v565_v20 }
 0x271   :  { %v599_v28 = vpack.c.bf16 %v594_v25, %v592_v24 }
 0x273   :  { %608 = vmatpush.bf16.msrb.mxu0 %v599_v28 }
 0x277   :  { %609 = vmatpush.bf16.msrb.mxu0 %v598_v34 }
 0x27b   :  { %610 = vmatpush.bf16.msrb.mxu0 %v597_v38 }
 0x27f   :  { %611 = vmatpush.bf16.msrb.mxu0 %v596_v39 }
 0x282   :  { %784 = vmatmul.msk.bf16.vlgmr.msrb.gmra.mxu0 %vm295_vm0, %v1029_v13 }
 0x292   :  { %785 = vmatmul.msk.bf16.gmra.mxu0 %vm295_vm0, %v1033_v18 }
 0x2a2   :  { %786 = vmatmul.msk.bf16.gmra.mxu0 %vm295_vm0, %v1037_v23 }
 0x2b2   :  { %787 = vmatmul.msk.bf16.gmra.mxu0 %vm295_vm0, %v1041_v30 }
 0x2ff   :  { %v613_v41 = vpop.f32.mrf.mxu0 }
 0x300   :  { %v614_v42 = vadd.f32 %v838_v40, %v613_v41 }
 0x302   :  { %633 = vst [vmem:[%s1098_s7] sm:$0xff] %v614_v42 }
 0x307   :  { %v615_v13 = vpop.f32.mrf.mxu0 }
 0x308   :  { %v616_v43 = vadd.f32 %v838_v40, %v615_v13 }
 0x30a   :  { %634 = vst [vmem:[%s1098_s7 + $0x8] sm:$0xff] %v616_v43 }
 0x30f   :  { %v618_v18 = vpop.f32.mrf.mxu0 }
 0x310   :  { %v619_v23 = vadd.f32 %v838_v40, %v618_v18 }
 0x312   :  { %635 = vst [vmem:[%s1098_s7 + $0x10] sm:$0xff] %v619_v23 }
 0x317   :  { %v620_v30 = vpop.f32.mrf.mxu0 }
 0x318   :  { %v621_v44 = vadd.f32 %v838_v40, %v620_v30 }
 0x31a   :  { %636 = vst [vmem:[%s1098_s7 + $0x18] sm:$0xff] %v621_v44 }
 0x31f   :  { %v623_v45 = vpop.f32.mrf.mxu0 }
 0x320   :  { %v624_v46 = vadd.f32 %v838_v40, %v623_v45 }
 0x322   :  { %637 = vst [vmem:[%s1098_s7 + $0x20] sm:$0xff] %v624_v46 }
 0x327   :  { %v625_v47 = vpop.f32.mrf.mxu0 }
 0x328   :  { %v626_v48 = vadd.f32 %v838_v40, %v625_v47 }
 0x32a   :  { %638 = vst [vmem:[%s1098_s7 + $0x28] sm:$0xff] %v626_v48 }
 0x32f   :  { %v628_v49 = vpop.f32.mrf.mxu0 }
 0x330   :  { %v629_v50 = vadd.f32 %v838_v40, %v628_v49 }
 0x332   :  { %639 = vst [vmem:[%s1098_s7 + $0x30] sm:$0xff] %v629_v50 }
 0x337   :  { %v630_v51 = vpop.f32.mrf.mxu0 }
 0x338   :  { %v631_v52 = vadd.f32 %v838_v40, %v630_v51 }
 0x33a   :  { %640 = vst [vmem:[%s1098_s7 + $0x38] sm:$0xff] %v631_v52 }
 0x33b   :  { %645 = vsyncpa [#allocation3], 1 }
 0x33c   :  { %646 = vsyncpa [#allocation5], 1 }
 0x33d   :  { %647 = vsyncpa [#allocation8], 1 }

</bundles_post_ra>
